<compile_context>
chip_gen: v7x
topology: tpu7x:2x2x1
jax: 0.10.0
libtpu: 0.0.40
codegen_flags: <defaults>
</compile_context>

<pallas_src>
import functools

import jax
import jax.numpy as jnp
from jax.experimental import pallas as pl
from jax.experimental.pallas import tpu as pltpu

_NEG_INF = -1e30  # finite "minus infinity" for padded softmax lanes


def _round_up(x, m):
    return ((x + m - 1) // m) * m


def _mlp_prior_kernel(depth, hidden_bf16, x_ref, *refs):
    # refs = (w0, b0, w1, b1, ..., w_out, b_out, ps_ref)
    param_refs = refs[:-1]
    ps_ref = refs[-1]

    cur = x_ref[...].astype(jnp.float32)  # (TB, D)

    # Hidden layers: Linear -> Tanh (Dropout is identity in eval mode).
    # Weights are bf16 (full-rate MXU); accumulation, bias add and tanh in f32.
    for i in range(depth - 1):
        w = param_refs[2 * i][...]          # (D_in, D_out) bf16
        b = param_refs[2 * i + 1][...]      # (1, D_out)    f32
        y = jnp.dot(cur.astype(jnp.bfloat16), w,
                    preferred_element_type=jnp.float32) + b
        cur = jnp.tanh(y)
        if hidden_bf16:
            # v6e/v7x: native bf16 VPU -> halve pack/cast work and vreg footprint.
            cur = cur.astype(jnp.bfloat16)

    # Output layer: Linear -> Softmax over last dim (torch Softmax(dim=1) on 2D).
    w_out = param_refs[2 * (depth - 1)][...]      # (D, size_pad) bf16, pad cols = 0
    b_out = param_refs[2 * (depth - 1) + 1][...]  # (1, size_pad) f32,  pad = -1e30
    logits = jnp.dot(cur.astype(jnp.bfloat16), w_out,
                     preferred_element_type=jnp.float32) + b_out

    m = jnp.max(logits, axis=-1, keepdims=True)
    e = jnp.exp(logits - m)                       # padded lanes -> exp(-huge) = 0
    denom = jnp.sum(e, axis=-1, keepdims=True)
    # Exact divide (NOT pl.reciprocal(approx=True)): downstream categorical
    # sampling needs rows that sum to 1 to f32 rounding.
    ps_ref[...] = e / denom


def _choose_batch_tile(B, D, size_pad, tile_b):
    """Pick the batch tile: as large as VMEM allows (up to tile_b), but keep the
    batch grid >= 2 steps when possible so v7x's two TensorCores both get work."""
    per_row_bytes = 2 * (D + size_pad) * 4          # double-buffered f32 in + out tile
    act_budget = 24 * 1024 * 1024                   # activation share of the VMEM budget
    vmem_cap_rows = max(8, (act_budget // per_row_bytes) // 8 * 8)
    B8 = _round_up(B, 8)
    tb = min(B8, _round_up(tile_b, 8), vmem_cap_rows)
    if tb >= B8 and B8 >= 16:
        # A single monolithic tile would leave one v7x core idle; split in two.
        tb = _round_up(pl.cdiv(B8, 2), 8)
    return tb


def multi_layer_index_prior_forward(observation, params, size, depth, *,
                                    tile_b=512, hidden_bf16=False):
    """observation: (B, D) f32.  params: list of (W, b), W as (in, out), b as (1, out).

    Returns (vs, ps) where vs is (B, size) int32 arange-per-row and ps is the
    LANE-PADDED (B, size_pad) softmax; columns >= size hold exact zeros.  Keeping
    the lane-dense slab avoids an extra HBM copy and masked downstream stores.
    """
    B, D = observation.shape
    assert params[depth - 1][0].shape[-1] == size, (
        "output layer width must equal `size` (padded-softmax relies on it)")

    # Lane-dense output: pad `size` up to a multiple of 128.
    size_pad = max(128, _round_up(size, 128))

    # Batch tiling.
    TB = _choose_batch_tile(B, D, size_pad, tile_b)
    B_pad = _round_up(B, TB)
    obs = observation if B_pad == B else jnp.pad(observation, ((0, B_pad - B), (0, 0)))

    # Prepare parameters: bf16 weights, f32 (1, out) biases; pad the output layer
    # (zero weight columns + -1e30 bias) so padded lanes get exactly 0 probability.
    flat_params = []
    for li, (w, b) in enumerate(params):
        w = w.astype(jnp.bfloat16)
        b = b.reshape(1, -1).astype(jnp.float32)
        if li == depth - 1 and size_pad != size:
            w = jnp.pad(w, ((0, 0), (0, size_pad - size)))
            b = jnp.pad(b, ((0, 0), (0, size_pad - size)), constant_values=_NEG_INF)
        flat_params.append(w)
        flat_params.append(b)

    # BlockSpecs: activations stream per batch tile; weights/biases stay VMEM
    # resident (constant block index across the grid).  Default-arg capture avoids
    # the late-binding closure bug.
    in_specs = [pl.BlockSpec((TB, D), lambda i: (i, 0))]
    for a in flat_params:
        in_specs.append(pl.BlockSpec(a.shape, lambda i, _nd=a.ndim: (0,) * _nd))
    out_spec = pl.BlockSpec((TB, size_pad), lambda i: (i, 0))

    # VMEM budget: resident params + double-buffered activation/output tiles,
    # 2x headroom, capped at 48 MiB (v7x: 64 MiB physical -> ~25% headroom;
    # v5e/v6e: 128 MiB physical, plenty).
    param_bytes = sum(int(a.size) * a.dtype.itemsize for a in flat_params)
    act_bytes = 2 * (TB * D * 4 + TB * size_pad * 4)
    vmem_limit = int(min(48 * 1024 * 1024,
                         max(16 * 1024 * 1024, 2 * (param_bytes + act_bytes))))

    # Advisory cost estimate so XLA can overlap neighbors around this small call.
    flops = 2 * B_pad * D * ((depth - 1) * D + size_pad)
    transcendentals = B_pad * ((depth - 1) * D + size_pad)       # tanh + exp
    bytes_accessed = (obs.size * 4 + param_bytes + B_pad * size_pad * 4)
    cost = pl.CostEstimate(flops=flops, transcendentals=transcendentals,
                           bytes_accessed=bytes_accessed)

    ps_pad = pl.pallas_call(
        functools.partial(_mlp_prior_kernel, depth, hidden_bf16),
        out_shape=jax.ShapeDtypeStruct((B_pad, size_pad), jnp.float32),
        grid_spec=pltpu.PrefetchScalarGridSpec(
            num_scalar_prefetch=0,
            grid=(B_pad // TB,),
            in_specs=in_specs,
            out_specs=out_spec,
        ),
        compiler_params=pltpu.CompilerParams(
            dimension_semantics=("parallel",),
            vmem_limit_bytes=vmem_limit,
        ),
        cost_estimate=cost,
    )(obs, *flat_params)

    # Row-slice only if the batch was padded; keep the lane-dense column padding
    # (exact zeros) to avoid an extra HBM copy + lane-sparse downstream stores.
    ps = ps_pad if B_pad == B else ps_pad[:B]
    vs = jnp.broadcast_to(jnp.arange(size, dtype=jnp.int32)[None, :], (B, size))
    return vs, ps


def init_params(key, observation_size, size, depth):
    """nn.Linear-style init: U(-1/sqrt(fan_in), 1/sqrt(fan_in)); W stored (in, out)."""
    params = []
    dims = [(observation_size, observation_size)] * (depth - 1) + [
        (observation_size, size)
    ]
    for (fan_in, fan_out) in dims:
        key, kw, kb = jax.random.split(key, 3)
        bound = 1.0 / jnp.sqrt(jnp.float32(fan_in))
        w = jax.random.uniform(
            kw, (fan_in, fan_out), jnp.float32, minval=-bound, maxval=bound
        )
        b = jax.random.uniform(
            kb, (1, fan_out), jnp.float32, minval=-bound, maxval=bound
        )
        params.append((w, b))
    return params


def reference_forward(observation, params, depth):
    """Pure-JAX reference mirroring the kernel numerics (bf16 dots, f32 math)."""
    cur = observation.astype(jnp.float32)
    for i in range(depth - 1):
        w, b = params[i]
        y = jnp.dot(cur.astype(jnp.bfloat16), w.astype(jnp.bfloat16),
                    preferred_element_type=jnp.float32) + b.reshape(1, -1)
        cur = jnp.tanh(y)
    w, b = params[depth - 1]
    logits = jnp.dot(cur.astype(jnp.bfloat16), w.astype(jnp.bfloat16),
                     preferred_element_type=jnp.float32) + b.reshape(1, -1)
    return jax.nn.softmax(logits, axis=-1)


if __name__ == "__main__":
    # Small shapes consistent with the module's forward.  batch=256 exercises two
    # 128-row batch tiles (grid=(2,)) so the pipeline / megacore path stays live.
    batch = 256
    observation_size = 32
    size = 16
    depth = 3

    key = jax.random.PRNGKey(0)
    key, k_obs = jax.random.split(key)
    observation = jax.random.normal(
        k_obs, (batch, observation_size), jnp.float32
    )
    params = init_params(key, observation_size, size, depth)

    vs, ps = multi_layer_index_prior_forward(observation, params, size, depth)
    vs = jax.block_until_ready(vs)
    ps = jax.block_until_ready(ps)

    size_pad = ps.shape[1]
    ps_ref = reference_forward(observation, params, depth)

    assert vs.shape == (batch, size)
    assert vs.dtype == jnp.int32
    assert ps.shape == (batch, size_pad)
    # Padded lanes carry (essentially) zero probability.
    assert float(jnp.max(jnp.abs(ps[:, size:]))) <= 1e-6
    # Exact-divide softmax: every row sums to 1 (to f32 rounding).
    assert jnp.allclose(jnp.sum(ps, axis=-1), 1.0, atol=1e-3)
    # Matches the pure-JAX reference (tolerances cover the bf16 matmul operands).
    assert jnp.allclose(ps[:, :size], ps_ref, atol=2e-3, rtol=2e-3)

    print("KERNEL_OK")
</pallas_src>

<mosaic_0001>
module attributes {stable_mosaic.version = 11 : i64} {
  func.func @_mlp_prior_kernel(%arg0: i32, %arg1: memref<128x32xf32, #tpu.memory_space<vmem>>, %arg2: memref<32x32xbf16, #tpu.memory_space<vmem>>, %arg3: memref<1x32xf32, #tpu.memory_space<vmem>>, %arg4: memref<32x32xbf16, #tpu.memory_space<vmem>>, %arg5: memref<1x32xf32, #tpu.memory_space<vmem>>, %arg6: memref<32x128xbf16, #tpu.memory_space<vmem>>, %arg7: memref<1x128xf32, #tpu.memory_space<vmem>>, %arg8: memref<128x128xf32, #tpu.memory_space<vmem>>) attributes {dimension_semantics = [#tpu.dimension_semantics<parallel>], iteration_bounds = array<i64: 2>, scalar_prefetch = 0 : i64, scratch_operands = 0 : i64, tpu.core_type = #tpu.core_type<tc>, window_params = [{transform_indices = @transform_0, window_bounds = array<i64: 128, 32>}, {pipeline_mode = #tpu.pipeline_mode<synchronous>, transform_indices = @transform_1, window_bounds = array<i64: 32, 32>}, {pipeline_mode = #tpu.pipeline_mode<synchronous>, transform_indices = @transform_2, window_bounds = array<i64: 1, 32>}, {pipeline_mode = #tpu.pipeline_mode<synchronous>, transform_indices = @transform_3, window_bounds = array<i64: 32, 32>}, {pipeline_mode = #tpu.pipeline_mode<synchronous>, transform_indices = @transform_4, window_bounds = array<i64: 1, 32>}, {pipeline_mode = #tpu.pipeline_mode<synchronous>, transform_indices = @transform_5, window_bounds = array<i64: 32, 128>}, {pipeline_mode = #tpu.pipeline_mode<synchronous>, transform_indices = @transform_6, window_bounds = array<i64: 1, 128>}, {transform_indices = @transform_7, window_bounds = array<i64: 128, 128>}]} {
    %c0 = arith.constant 0 : index
    %c0_0 = arith.constant 0 : index
    %0 = vector.load %arg1[%c0, %c0_0] : memref<128x32xf32, #tpu.memory_space<vmem>>, vector<128x32xf32>
    %c0_1 = arith.constant 0 : index
    %c0_2 = arith.constant 0 : index
    %1 = vector.load %arg2[%c0_1, %c0_2] : memref<32x32xbf16, #tpu.memory_space<vmem>>, vector<32x32xbf16>
    %c0_3 = arith.constant 0 : index
    %c0_4 = arith.constant 0 : index
    %2 = vector.load %arg3[%c0_3, %c0_4] : memref<1x32xf32, #tpu.memory_space<vmem>>, vector<1x32xf32>
    %3 = arith.truncf %0 : vector<128x32xf32> to vector<128x32xbf16>
    %cst = arith.constant dense<0.000000e+00> : vector<128x32xf32>
    %4 = tpu.matmul %3, %1, %cst {dimension_numbers = #tpu.dot_dimension_numbers<[1], [0], [0], [1], [0, 0, 1, 1], [], []>} : vector<128x32xbf16>, vector<32x32xbf16>, vector<128x32xf32> -> vector<128x32xf32>
    %5 = vector.broadcast %2 : vector<1x32xf32> to vector<128x32xf32>
    %6 = arith.addf %4, %5 : vector<128x32xf32>
    %7 = math.tanh %6 : vector<128x32xf32>
    %c0_5 = arith.constant 0 : index
    %c0_6 = arith.constant 0 : index
    %8 = vector.load %arg4[%c0_5, %c0_6] : memref<32x32xbf16, #tpu.memory_space<vmem>>, vector<32x32xbf16>
    %c0_7 = arith.constant 0 : index
    %c0_8 = arith.constant 0 : index
    %9 = vector.load %arg5[%c0_7, %c0_8] : memref<1x32xf32, #tpu.memory_space<vmem>>, vector<1x32xf32>
    %10 = arith.truncf %7 : vector<128x32xf32> to vector<128x32xbf16>
    %cst_9 = arith.constant dense<0.000000e+00> : vector<128x32xf32>
    %11 = tpu.matmul %10, %8, %cst_9 {dimension_numbers = #tpu.dot_dimension_numbers<[1], [0], [0], [1], [0, 0, 1, 1], [], []>} : vector<128x32xbf16>, vector<32x32xbf16>, vector<128x32xf32> -> vector<128x32xf32>
    %12 = vector.broadcast %9 : vector<1x32xf32> to vector<128x32xf32>
    %13 = arith.addf %11, %12 : vector<128x32xf32>
    %14 = math.tanh %13 : vector<128x32xf32>
    %c0_10 = arith.constant 0 : index
    %c0_11 = arith.constant 0 : index
    %15 = vector.load %arg6[%c0_10, %c0_11] : memref<32x128xbf16, #tpu.memory_space<vmem>>, vector<32x128xbf16>
    %c0_12 = arith.constant 0 : index
    %c0_13 = arith.constant 0 : index
    %16 = vector.load %arg7[%c0_12, %c0_13] : memref<1x128xf32, #tpu.memory_space<vmem>>, vector<1x128xf32>
    %17 = arith.truncf %14 : vector<128x32xf32> to vector<128x32xbf16>
    %cst_14 = arith.constant dense<0.000000e+00> : vector<128x128xf32>
    %18 = tpu.matmul %17, %15, %cst_14 {dimension_numbers = #tpu.dot_dimension_numbers<[1], [0], [0], [1], [0, 0, 1, 1], [], []>} : vector<128x32xbf16>, vector<32x128xbf16>, vector<128x128xf32> -> vector<128x128xf32>
    %19 = vector.broadcast %16 : vector<1x128xf32> to vector<128x128xf32>
    %20 = arith.addf %18, %19 : vector<128x128xf32>
    %cst_15 = arith.constant dense<0xFF800000> : vector<128xf32>
    %21 = vector.multi_reduction <maximumf>, %20, %cst_15 [1] : vector<128x128xf32> to vector<128xf32>
    %22 = vector.shape_cast %21 : vector<128xf32> to vector<128x1xf32>
    %23 = vector.broadcast %22 : vector<128x1xf32> to vector<128x128xf32>
    %24 = arith.subf %20, %23 : vector<128x128xf32>
    %25 = math.exp %24 : vector<128x128xf32>
    %cst_16 = arith.constant dense<0.000000e+00> : vector<128xf32>
    %26 = vector.multi_reduction <add>, %25, %cst_16 [1] : vector<128x128xf32> to vector<128xf32>
    %27 = vector.shape_cast %26 : vector<128xf32> to vector<128x1xf32>
    %28 = vector.broadcast %27 : vector<128x1xf32> to vector<128x128xf32>
    %29 = arith.divf %25, %28 : vector<128x128xf32>
    %c0_17 = arith.constant 0 : index
    %c0_18 = arith.constant 0 : index
    %30 = vector.load %arg8[%c0_17, %c0_18] : memref<128x128xf32, #tpu.memory_space<vmem>>, vector<128x128xf32>
    tpu.vector_store %arg8[%c0_17, %c0_18], %29 {strides = array<i32>} : memref<128x128xf32, #tpu.memory_space<vmem>>, vector<128x128xf32>,
    return
  }
  func.func @transform_0(%arg0: i32) -> (i32, i32) {
    %c0_i32 = arith.constant 0 : i32
    %c0_i32_0 = arith.constant 0 : i32
    return %arg0, %c0_i32 : i32, i32
  }
  func.func @transform_1(%arg0: i32) -> (i32, i32) {
    %c0_i32 = arith.constant 0 : i32
    %c0_i32_0 = arith.constant 0 : i32
    %c0_i32_1 = arith.constant 0 : i32
    return %c0_i32, %c0_i32_0 : i32, i32
  }
  func.func @transform_2(%arg0: i32) -> (i32, i32) {
    %c0_i32 = arith.constant 0 : i32
    %c0_i32_0 = arith.constant 0 : i32
    %c0_i32_1 = arith.constant 0 : i32
    return %c0_i32, %c0_i32_0 : i32, i32
  }
  func.func @transform_3(%arg0: i32) -> (i32, i32) {
    %c0_i32 = arith.constant 0 : i32
    %c0_i32_0 = arith.constant 0 : i32
    %c0_i32_1 = arith.constant 0 : i32
    return %c0_i32, %c0_i32_0 : i32, i32
  }
  func.func @transform_4(%arg0: i32) -> (i32, i32) {
    %c0_i32 = arith.constant 0 : i32
    %c0_i32_0 = arith.constant 0 : i32
    %c0_i32_1 = arith.constant 0 : i32
    return %c0_i32, %c0_i32_0 : i32, i32
  }
  func.func @transform_5(%arg0: i32) -> (i32, i32) {
    %c0_i32 = arith.constant 0 : i32
    %c0_i32_0 = arith.constant 0 : i32
    %c0_i32_1 = arith.constant 0 : i32
    return %c0_i32, %c0_i32_0 : i32, i32
  }
  func.func @transform_6(%arg0: i32) -> (i32, i32) {
    %c0_i32 = arith.constant 0 : i32
    %c0_i32_0 = arith.constant 0 : i32
    %c0_i32_1 = arith.constant 0 : i32
    return %c0_i32, %c0_i32_0 : i32, i32
  }
  func.func @transform_7(%arg0: i32) -> (i32, i32) {
    %c0_i32 = arith.constant 0 : i32
    %c0_i32_0 = arith.constant 0 : i32
    return %arg0, %c0_i32 : i32, i32
  }
}

</mosaic_0001>

<bundles_post_ra>
// kernel: tpu_custom_call.1
= control target key start
LH: loop header
LB: loop body
LE: loop exit
PB: predicated region body
PF: predicated region fallthrough
CT: control target
= control target key end

     0   :  { %12 = vsyncpa [#allocation3], 0  ;;  %s1734_s0 = inlined_call_operand.vmem [shape: f32[256,32], index: 0, kind: input, shape index: {}]   ;;  %s1735_s1 = inlined_call_operand.vmem [shape: bf16[32,32], index: 1, kind: input, shape index: {}]   ;;  %s1736_s2 = inlined_call_operand.vmem [shape: f32[1,32], index: 2, kind: input, shape index: {}]   ;;  %s1737_s3 = inlined_call_operand.vmem [shape: bf16[32,32], index: 3, kind: input, shape index: {}]   ;;  %s1738_s4 = inlined_call_operand.vmem [shape: f32[1,32], index: 4, kind: input, shape index: {}]   ;;  %s1739_s5 = inlined_call_operand.vmem [shape: bf16[32,128], index: 5, kind: input, shape index: {}]   ;;  %s1740_s6 = inlined_call_operand.vmem [shape: f32[1,128], index: 6, kind: input, shape index: {}]   ;;  %s1741_s7 = inlined_call_operand.hbm [shape: f32[256,128], index: 7, kind: output, shape index: {}]  }
   0x1   :  { %14 = vsyncpa [#allocation3 + $0x1], 0  ;;  %s1444_s24 = smov 0   ;;  %s1446_s25 = smov 0  }
   0x2   :  { %s1448_s26 = smov 0   ;;  %s1450_s27 = smov 0  }
   0x3 LB: > { %s1465_s28 = sadd.s32 4294967295, %s1399_s27   ;;  %s1022_s29 = sadd.s32 4294967294, %s1399_s27   ;;  %s1399_s27 = sphi %s1450_s27, %s1747_s27   ;;  %s1395_s26 = sphi %s1448_s26, %s1746_s26   ;;  %s1391_s25 = sphi %s1446_s25, %s1745_s25   ;;  %s1387_s24 = sphi %s1444_s24, %s1744_s24  }
   0x4   : > { %s1469_s30 = sadd.s32 1, %s1399_s27   ;;  %s179_s8 = sadd.s32 1, %s1395_s26 }
   0x5   : > { %s176_s9 = ssub.s32 %s1399_s27, %s1469_s30  ;;  %p189_p0 = scmp.ne.s32.totalorder %s1395_s26, %s1391_s25 }
   0x6   : > { %p177_p1 = scmp.eq.s32.totalorder %s176_s9, 0  ;;  %p190_p2 = scmp.eq.s32.totalorder %s1465_s28, 1 }
   0x7   : > { %p195_p3 = scmp.ne.s32.totalorder %s1391_s25, %s1387_s24  ;;  %p196_p4 = scmp.eq.s32.totalorder %s1022_s29, 1 }
   0x8   : > { %s1480_s10 = scalar_select %p177_p1, %s1395_s26, %s179_s8  }
   0x9   : > { %p1482_p5 = por %p190_p2, %p189_p0  ;;  %p1486_p6 = por %p196_p4, %p195_p3 }
   0xa   : > { %p1025_p7 = scmp.ge.s32.totalorder %s1399_s27, 1  ;;  %p241_p8 = scmp.lt.s32.totalorder %s1399_s27, 3 }
   0xc   : > { %p242_p9 = pnand %p1025_p7, %p241_p8 }
   0xd   : > { %v1203_v0 = vld [vmem:[%s1735_s1] sm:$0xff] (!%p242_p9)   ;;  %s1027_s15 = sshll.u32 (!%p242_p9), %s1465_s28, 4  ;;  %v1204_v1 = vld [vmem:[%s1735_s1 + $0x8] sm:$0xff] (!%p242_p9)   ;;  %vm328_vm0 = vcmask (!%p242_p9), 261120   ;;  %s270_s22 = sand.u32 (!%p242_p9), 1, %s1391_s25  }
   0xe   : > { %245 = sbr.rel (%p242_p9) target bundleno = 1063 (0x427), region = 48  ;;  %p274_p10 = scmp.lt.s32.totalorder (!%p242_p9), %s1027_s15, 31  ;;  %1098 = vmatprep.subr.bf16.mxu0 (!%p242_p9), %v1203_v0  ;;  %1158 = vmatprep.subr.bf16.mxu1 (!%p242_p9), %v1203_v0  ;;  %v1205_v26 = vld [vmem:[%s1737_s3] sm:$0xff] (!%p242_p9)   ;;  %v1206_v27 = vld [vmem:[%s1737_s3 + $0x8] sm:$0xff] (!%p242_p9)  }
   0xf   : > { %1099 = vmatpush3.bf16.msra.mxu0 (!%p242_p9), %v1203_v0  ;;  %1160 = vmatpush3.bf16.msra.mxu1 (!%p242_p9), %v1203_v0  ;;  %v1029_v28 = vld [vmem:[%s1736_s2] ss:$0 sm:$0xff] (!%p242_p9)  ;;  %s1026_s23 = sshll.u32 (!%p242_p9), %s270_s22, 7  ;;  %s1067_s8 = sshll.u32 (!%p242_p9), %s1465_s28, 11 }
  0x10   : > { %1100 = vmatprep.subr.bf16.mxu0 (!%p242_p9), %v1204_v1  ;;  %1159 = vmatprep.subr.bf16.mxu1 (!%p242_p9), %v1204_v1  ;;  %s1649_s29 = scalar_lea.vmem (!%p242_p9), [#allocation2], %s1026_s23  ;;  %s1693_s28 = scalar_lea.sflag (!%p242_p9), [#allocation3], %s270_s22 }
  0x11   : > { %s960_s9 = sshll.u32 (!%p242_p9), %s1649_s29, 4  ;;  %s1401_s17 = smov (!%p242_p9), [#allocation2]   ;;  %s1687_s9 = int_to_ptr.vmem [resolvable:$true] %s960_s9 }
  0x12   : > { %s1337_s16 = scalar_lea.vmem (!%p242_p9), %s1687_s9, 2048 }
  0x13   : > { %1101 = vmatpush3.bf16.msra.mxu0 (!%p242_p9), %v1204_v1  ;;  %1161 = vmatpush3.bf16.msra.mxu1 (!%p242_p9), %v1204_v1  ;;  %p1338_p11 = scmp.ne.s32.totalorder (!%p242_p9), %s1687_s9, %s1337_s16 }
  0x14   : > { %1118 = vmatprep.subr.bf16.mxu1 (!%p242_p9), %v1205_v26 }
  0x15   : > { %s1749_s15 = smov (!%p274_p10, %s1027_s15), 31  ;;  %p1339_p12 = pnand %p1338_p11, %p1482_p5 }
  0x16   : > { %s1028_s18 = sshll.u32 %s1749_s15, 3  ;;  %s1685_s15 = scalar_lea.hbm %s1741_s7, %s1067_s8 }
  0x17   : > { %s1502_s21 = scalar_lea.vmem %s1734_s0, %s1028_s18  ;;  %p1340_p13 = pneg %p1339_p12 }
  0x18   : > { %v281_v2 = vld [vmem:[%s1502_s21] sm:$0xff]  ;;  %v282_v3 = vld [vmem:[%s1502_s21 + $0x8] sm:$0xff]  ;;  %v283_v4 = vld [vmem:[%s1502_s21 + $0x10] sm:$0xff]  ;;  %s1341_s18 = sshll.u32 %s1401_s17, 4  ;;  %s1342_s18 = int_to_ptr.vmem [resolvable:$false] %s1341_s18 }
  0x19   : > { %v302_v5 = vpack.c.bf16 %v282_v3, %v281_v2  ;;  %v284_v6 = vld [vmem:[%s1502_s21 + $0x18] sm:$0xff]  ;;  %v285_v7 = vld [vmem:[%s1502_s21 + $0x20] sm:$0xff]  ;;  %v286_v8 = vld [vmem:[%s1502_s21 + $0x28] sm:$0xff]  ;;  %s1343_s19 = scalar_lea.vmem %s1342_s18, 4096  ;;  %p1344_p0 = scmp.lt.s32.totalorder %s1687_s9, %s1342_s18 }
  0x1a   : > { %v303_v9 = vpack.c.bf16 %v284_v6, %v283_v4  ;;  %v304_v10 = vpack.c.bf16 %v286_v8, %v285_v7  ;;  %v289_v11 = vld [vmem:[%s1502_s21 + $0x40] sm:$0xff]  ;;  %v290_v12 = vld [vmem:[%s1502_s21 + $0x48] sm:$0xff]  ;;  %v291_v13 = vld [vmem:[%s1502_s21 + $0x50] sm:$0xff]  ;;  %p1345_p1 = scmp.lt.s32.totalorder %s1343_s19, %s1337_s16 }
  0x1b   : > { %1102 = vmatprep.mubr.msk.bf16.mxu0 %vm328_vm0, %v302_v5  ;;  %v292_v14 = vld [vmem:[%s1502_s21 + $0x58] sm:$0xff]  ;;  %v306_v15 = vpack.c.bf16 %v290_v12, %v289_v11  ;;  %v293_v17 = vld [vmem:[%s1502_s21 + $0x60] sm:$0xff]  ;;  %v294_v18 = vld [vmem:[%s1502_s21 + $0x68] sm:$0xff] }
  0x1c   : > { %1103 = vmatmul.mubr.msk.bf16.vlgmr.msra.gmra.mrb[0].mxu0 %vm328_vm0, %v303_v9  ;;  %v307_v16 = vpack.c.bf16 %v292_v14, %v291_v13  ;;  %v287_v19 = vld [vmem:[%s1502_s21 + $0x30] sm:$0xff]  ;;  %v288_v20 = vld [vmem:[%s1502_s21 + $0x38] sm:$0xff]  ;;  %v308_v21 = vpack.c.bf16 %v294_v18, %v293_v17  ;;  %p1346_p2 = por %p1345_p1, %p1344_p0 }
  0x1d   : > { %1106 = vmatprep.mubr.msk.bf16.mxu0 %vm328_vm0, %v304_v10  ;;  %1110 = vmatprep.mubr.msk.bf16.mxu1 %vm328_vm0, %v306_v15  ;;  %v305_v22 = vpack.c.bf16 %v288_v20, %v287_v19  ;;  %v295_v23 = vld [vmem:[%s1502_s21 + $0x70] sm:$0xff]  ;;  %v296_v24 = vld [vmem:[%s1502_s21 + $0x78] sm:$0xff] }
  0x1e   : > { %1111 = vmatmul.mubr.msk.bf16.vlgmr.msra.gmra.mrb[0].mxu1 %vm328_vm0, %v307_v16  ;;  %v309_v25 = vpack.c.bf16 %v296_v24, %v295_v23  ;;  %v1040_v23 = vld [vmem:[%s1738_s4] ss:$0 sm:$0xff]  ;;  %p1347_p3 = pnand %p1346_p2, %p1340_p13 }
  0x1f   : > { %1114 = vmatprep.mubr.msk.bf16.mxu1 %vm328_vm0, %v308_v21  ;;  %1119 = vmatpush3.bf16.msra.mxu1 %v1205_v26  ;;  %v1207_v21 = vld [vmem:[%s1739_s5] sm:$0xff]  }
  0x20   : > { %1120 = vmatprep.subr.bf16.mxu1 %v1206_v27  ;;  %1138 = vmatprep.subr.bf16.mxu0 %v1207_v21 }
  0x21   : > { %1139 = vmatpush3.bf16.msra.mxu0 %v1207_v21 }
  0x23   : > { %1121 = vmatpush3.bf16.msra.mxu1 %v1206_v27 }
  0x24   : > { %1107 = vmatmul.mubr.msk.bf16.gmra.mrb[4].mxu0 %vm328_vm0, %v305_v22  ;;  %v1208_v22 = vld [vmem:[%s1739_s5 + $0x8] sm:$0xff]  }
  0x25   : > { %1140 = vmatprep.subr.bf16.mxu0 %v1208_v22 }
  0x26   : > { %1115 = vmatmul.mubr.msk.bf16.gmra.mrb[4].mxu1 %vm328_vm0, %v309_v25  ;;  %1141 = vmatpush3.bf16.msra.mxu0 %v1208_v22 }
  0xef   : > { %v1104_v29 = vpop.f32.mrb[0].mxu0 }
  0xf0   : > { %v396_v30 = vadd.f32 %v1104_v29, %v1029_v28  ;;  %v387_v31 = vpop.f32.mrb[1].mxu0 }
  0xf1   : > { %v388_v32 = vadd.f32 %v1029_v28, %v387_v31  ;;  %v1105_v33 = vpop.f32.mrb[2].mxu0  ;;  %v1112_v36 = vpop.f32.mrb[0].mxu1 }
  0xf2   : > { %1209 = vtanh.f32 %v396_v30  ;;  %v399_v34 = vadd.f32 %v1105_v33, %v1029_v28  ;;  %v390_v35 = vpop.f32.mrb[3].mxu0  ;;  %v428_v38 = vadd.f32 %v1112_v36, %v1029_v28  ;;  %v419_v39 = vpop.f32.mrb[1].mxu1 }
  0xf3   : > { %1211 = vtanh.f32 %v388_v32  ;;  %v391_v37 = vadd.f32 %v1029_v28, %v390_v35  ;;  %v420_v40 = vadd.f32 %v1029_v28, %v419_v39  ;;  %v1113_v41 = vpop.f32.mrb[2].mxu1 }
  0xf4   : > { %1213 = vtanh.f32 %v399_v34  ;;  %v431_v42 = vadd.f32 %v1113_v41, %v1029_v28  ;;  %v422_v43 = vpop.f32.mrb[3].mxu1 }
  0xf5   : > { %1215 = vtanh.f32 %v391_v37  ;;  %v423_v44 = vadd.f32 %v1029_v28, %v422_v43 }
  0xf6   : > { %1217 = vtanh.f32 %v428_v38 }
  0xf7   : > { %v1108_v45 = vpop.f32.mrb[4].mxu0  ;;  %1219 = vtanh.f32 %v420_v40 }
  0xf8   : > { %v412_v46 = vadd.f32 %v1108_v45, %v1029_v28  ;;  %v403_v47 = vpop.f32.mrb[5].mxu0  ;;  %1221 = vtanh.f32 %v431_v42 }
  0xf9   : > { %v404_v48 = vadd.f32 %v1029_v28, %v403_v47  ;;  %v1109_v49 = vpop.f32.mrb[6].mxu0  ;;  %1223 = vtanh.f32 %v423_v44  ;;  %v1116_v52 = vpop.f32.mrb[4].mxu1 }
  0xfa   : > { %1225 = vtanh.f32 %v412_v46  ;;  %v415_v50 = vadd.f32 %v1109_v49, %v1029_v28  ;;  %v406_v51 = vpop.f32.mrb[7].mxu0  ;;  %v444_v54 = vadd.f32 %v1116_v52, %v1029_v28  ;;  %v435_v55 = vpop.f32.mrb[5].mxu1 }
  0xfb   : > { %1227 = vtanh.f32 %v404_v48  ;;  %v407_v53 = vadd.f32 %v1029_v28, %v406_v51  ;;  %v436_v57 = vadd.f32 %v1029_v28, %v435_v55  ;;  %v1117_v58 = vpop.f32.mrb[6].mxu1 }
  0xfc   : > { %v1210_v56 = vpop.eup %1209  ;;  %1229 = vtanh.f32 %v415_v50  ;;  %v447_v60 = vadd.f32 %v1117_v58, %v1029_v28  ;;  %v438_v61 = vpop.f32.mrb[7].mxu1 }
  0xfd   : > { %v1212_v59 = vpop.eup %1211  ;;  %1231 = vtanh.f32 %v407_v53  ;;  %v439_v63 = vadd.f32 %v1029_v28, %v438_v61 }
  0xfe   : > { %v1214_v62 = vpop.eup %1213  ;;  %1233 = vtanh.f32 %v444_v54 }
  0xff   : > { %v1216_v0 = vpop.eup %1215  ;;  %v472_v1 = vpack.c.bf16 %v1214_v62, %v1210_v56  ;;  %1235 = vtanh.f32 %v436_v57 }
 0x100   : > { %v1218_v2 = vpop.eup %1217  ;;  %v471_v3 = vpack.c.bf16 %v1216_v0, %v1212_v59  ;;  %1237 = vtanh.f32 %v447_v60 }
 0x101   : > { %v1220_v4 = vpop.eup %1219  ;;  %1239 = vtanh.f32 %v439_v63 }
 0x102   : > { %v1222_v5 = vpop.eup %1221  ;;  %1122 = vmatprep.mubr.msk.bf16.mxu1 %vm328_vm0, %v471_v3 }
 0x103   : > { %v1224_v6 = vpop.eup %1223  ;;  %1123 = vmatmul.mubr.msk.bf16.vlgmr.msra.gmra.mrb[8].mxu1 %vm328_vm0, %v472_v1  ;;  %v476_v7 = vpack.c.bf16 %v1222_v5, %v1218_v2 }
 0x104   : > { %v1226_v8 = vpop.eup %1225  ;;  %v475_v9 = vpack.c.bf16 %v1224_v6, %v1220_v4 }
 0x105   : > { %v1228_v10 = vpop.eup %1227 }
 0x106   : > { %v1230_v11 = vpop.eup %1229 }
 0x107   : > { %v1232_v12 = vpop.eup %1231  ;;  %v474_v13 = vpack.c.bf16 %v1230_v11, %v1226_v8 }
 0x108   : > { %v1234_v14 = vpop.eup %1233  ;;  %v473_v15 = vpack.c.bf16 %v1232_v12, %v1228_v10 }
 0x109   : > { %v1236_v16 = vpop.eup %1235 }
 0x10a   : > { %v1238_v17 = vpop.eup %1237  ;;  %1126 = vmatprep.mubr.msk.bf16.mxu1 %vm328_vm0, %v473_v15 }
 0x10b   : > { %v1240_v18 = vpop.eup %1239  ;;  %1127 = vmatmul.mubr.msk.bf16.gmra.mrb[12].mxu1 %vm328_vm0, %v474_v13  ;;  %v478_v19 = vpack.c.bf16 %v1238_v17, %v1234_v14 }
 0x10c   : > { %1130 = vmatprep.mubr.msk.bf16.mxu1 %vm328_vm0, %v475_v9  ;;  %v477_v20 = vpack.c.bf16 %v1240_v18, %v1236_v16  ;;  %v1051_v16 = vld [vmem:[%s1740_s6] ss:$0 sm:$0xff] }
 0x113   : > { %1131 = vmatmul.mubr.msk.bf16.gmra.mrb[16].mxu1 %vm328_vm0, %v476_v7 }
 0x114   : > { %1134 = vmatprep.mubr.msk.bf16.mxu1 %vm328_vm0, %v477_v20 }
 0x11b   : > { %1135 = vmatmul.mubr.msk.bf16.gmra.mrb[20].mxu1 %vm328_vm0, %v478_v19 }
 0x1d6   : > { %v1124_v24 = vpop.f32.mrb[8].mxu1 }
 0x1d7   : > { %v564_v25 = vadd.f32 %v1124_v24, %v1040_v23  ;;  %v555_v26 = vpop.f32.mrb[9].mxu1 }
 0x1d8   : > { %v556_v27 = vadd.f32 %v1040_v23, %v555_v26  ;;  %v1125_v28 = vpop.f32.mrb[10].mxu1 }
 0x1d9   : > { %1241 = vtanh.f32 %v564_v25  ;;  %v567_v29 = vadd.f32 %v1125_v28, %v1040_v23  ;;  %v558_v30 = vpop.f32.mrb[11].mxu1 }
 0x1da   : > { %1243 = vtanh.f32 %v556_v27  ;;  %v559_v31 = vadd.f32 %v1040_v23, %v558_v30 }
 0x1db   : > { %1245 = vtanh.f32 %v567_v29 }
 0x1dc   : > { %1247 = vtanh.f32 %v559_v31 }
 0x1de   : > { %v1128_v32 = vpop.f32.mrb[12].mxu1 }
 0x1df   : > { %v580_v33 = vadd.f32 %v1128_v32, %v1040_v23  ;;  %v571_v34 = vpop.f32.mrb[13].mxu1 }
 0x1e0   : > { %v572_v35 = vadd.f32 %v1040_v23, %v571_v34  ;;  %v1129_v36 = vpop.f32.mrb[14].mxu1 }
 0x1e1   : > { %1249 = vtanh.f32 %v580_v33  ;;  %v583_v37 = vadd.f32 %v1129_v36, %v1040_v23  ;;  %v574_v38 = vpop.f32.mrb[15].mxu1 }
 0x1e2   : > { %1251 = vtanh.f32 %v572_v35  ;;  %v575_v39 = vadd.f32 %v1040_v23, %v574_v38 }
 0x1e3   : > { %v1242_v40 = vpop.eup %1241  ;;  %1253 = vtanh.f32 %v583_v37 }
 0x1e4   : > { %v1244_v41 = vpop.eup %1243  ;;  %1255 = vtanh.f32 %v575_v39 }
 0x1e5   : > { %v1246_v42 = vpop.eup %1245 }
 0x1e6   : > { %v1248_v43 = vpop.eup %1247  ;;  %v640_v44 = vpack.c.bf16 %v1246_v42, %v1242_v40  ;;  %v1132_v45 = vpop.f32.mrb[16].mxu1 }
 0x1e7   : > { %v596_v46 = vadd.f32 %v1132_v45, %v1040_v23  ;;  %v587_v47 = vpop.f32.mrb[17].mxu1  ;;  %v639_v48 = vpack.c.bf16 %v1248_v43, %v1244_v41 }
 0x1e8   : > { %v588_v49 = vadd.f32 %v1040_v23, %v587_v47  ;;  %v1133_v50 = vpop.f32.mrb[18].mxu1 }
 0x1e9   : > { %1257 = vtanh.f32 %v596_v46  ;;  %v599_v51 = vadd.f32 %v1133_v50, %v1040_v23  ;;  %v590_v52 = vpop.f32.mrb[19].mxu1  ;;  %1142 = vmatprep.mubr.msk.bf16.mxu0 %vm328_vm0, %v639_v48 }
 0x1ea   : > { %1259 = vtanh.f32 %v588_v49  ;;  %v591_v53 = vadd.f32 %v1040_v23, %v590_v52  ;;  %1143 = vmatmul.mubr.msk.bf16.vlgmr.msra.gmra.mrb[8].mxu0 %vm328_vm0, %v640_v44 }
 0x1eb   : > { %v1250_v54 = vpop.eup %1249  ;;  %1261 = vtanh.f32 %v599_v51 }
 0x1ec   : > { %v1252_v55 = vpop.eup %1251  ;;  %1263 = vtanh.f32 %v591_v53 }
 0x1ed   : > { %v1254_v56 = vpop.eup %1253 }
 0x1ee   : > { %v1256_v57 = vpop.eup %1255  ;;  %v1136_v58 = vpop.f32.mrb[20].mxu1  ;;  %v642_v59 = vpack.c.bf16 %v1254_v56, %v1250_v54 }
 0x1ef   : > { %v612_v60 = vadd.f32 %v1136_v58, %v1040_v23  ;;  %v603_v61 = vpop.f32.mrb[21].mxu1  ;;  %v641_v62 = vpack.c.bf16 %v1256_v57, %v1252_v55 }
 0x1f0   : > { %v604_v63 = vadd.f32 %v1040_v23, %v603_v61  ;;  %v1137_v0 = vpop.f32.mrb[22].mxu1 }
 0x1f1   : > { %1265 = vtanh.f32 %v612_v60  ;;  %v615_v1 = vadd.f32 %v1137_v0, %v1040_v23  ;;  %v606_v2 = vpop.f32.mrb[23].mxu1  ;;  %1146 = vmatprep.mubr.msk.bf16.mxu0 %vm328_vm0, %v641_v62 }
 0x1f2   : > { %1267 = vtanh.f32 %v604_v63  ;;  %v607_v3 = vadd.f32 %v1040_v23, %v606_v2  ;;  %1147 = vmatmul.mubr.msk.bf16.gmra.mrb[12].mxu0 %vm328_vm0, %v642_v59 }
 0x1f3   : > { %v1258_v4 = vpop.eup %1257  ;;  %1269 = vtanh.f32 %v615_v1 }
 0x1f4   : > { %v1260_v5 = vpop.eup %1259  ;;  %1271 = vtanh.f32 %v607_v3 }
 0x1f5   : > { %v1262_v6 = vpop.eup %1261 }
 0x1f6   : > { %v1264_v7 = vpop.eup %1263  ;;  %v644_v8 = vpack.c.bf16 %v1262_v6, %v1258_v4 }
 0x1f7   : > { %v643_v9 = vpack.c.bf16 %v1264_v7, %v1260_v5 }
 0x1f9   : > { %1150 = vmatprep.mubr.msk.bf16.mxu0 %vm328_vm0, %v643_v9 }
 0x1fa   : > { %1151 = vmatmul.mubr.msk.bf16.gmra.mrb[16].mxu0 %vm328_vm0, %v644_v8 }
 0x1fb   : > { %v1266_v10 = vpop.eup %1265 }
 0x1fc   : > { %v1268_v11 = vpop.eup %1267 }
 0x1fd   : > { %v1270_v12 = vpop.eup %1269 }
 0x1fe   : > { %v1272_v13 = vpop.eup %1271  ;;  %v646_v14 = vpack.c.bf16 %v1270_v12, %v1266_v10 }
 0x1ff   : > { %v645_v15 = vpack.c.bf16 %v1272_v13, %v1268_v11 }
 0x201   : > { %1154 = vmatprep.mubr.msk.bf16.mxu0 %vm328_vm0, %v645_v15 }
 0x202   : > { %1155 = vmatmul.mubr.msk.bf16.gmra.mrb[20].mxu0 %vm328_vm0, %v646_v14 }
 0x2bd   : > { %v1144_v17 = vpop.f32.mrb[8].mxu0 }
 0x2be   : > { %v732_v18 = vadd.f32 %v1144_v17, %v1051_v16  ;;  %v723_v19 = vpop.f32.mrb[9].mxu0 }
 0x2bf   : > { %v724_v20 = vadd.f32 %v1051_v16, %v723_v19  ;;  %v1145_v21 = vpop.f32.mrb[10].mxu0 }
 0x2c0   : > { %790 = vmax.xlane.f32.xlu1 %v732_v18  ;;  %v726_v22 = vpop.f32.mrb[11].mxu0  ;;  %v735_v23 = vadd.f32 %v1145_v21, %v1051_v16 }
 0x2c1   : > { %786 = vmax.xlane.f32.xlu0 %v724_v20  ;;  %v727_v24 = vadd.f32 %v1051_v16, %v726_v22 }
 0x2c4   : > { %792 = vmax.xlane.f32.xlu1 %v735_v23 }
 0x2c5   : > { %v1148_v25 = vpop.f32.mrb[12].mxu0  ;;  %788 = vmax.xlane.f32.xlu0 %v727_v24 }
 0x2c6   : > { %v748_v26 = vadd.f32 %v1148_v25, %v1051_v16  ;;  %v739_v27 = vpop.f32.mrb[13].mxu0 }
 0x2c7   : > { %v1149_v28 = vpop.f32.mrb[14].mxu0  ;;  %v740_v31 = vadd.f32 %v1051_v16, %v739_v27 }
 0x2c8   : > { %v751_v29 = vadd.f32 %v1149_v28, %v1051_v16  ;;  %v742_v30 = vpop.f32.mrb[15].mxu0 }
 0x2c9   : > { %798 = vmax.xlane.f32.xlu0 %v748_v26  ;;  %v743_v32 = vadd.f32 %v1051_v16, %v742_v30 }
 0x2ca   : > { %800 = vmax.xlane.f32.xlu1 %v751_v29 }
 0x2cd   : > { %v1152_v33 = vpop.f32.mrb[16].mxu0  ;;  %794 = vmax.xlane.f32.xlu0 %v740_v31 }
 0x2ce   : > { %v1565_v34 = vadd.f32 %v1152_v33, %v1051_v16  ;;  %v755_v35 = vpop.f32.mrb[17].mxu0  ;;  %796 = vmax.xlane.f32.xlu1 %v743_v32 }
 0x2cf   : > { %v1153_v36 = vpop.f32.mrb[18].mxu0  ;;  %v1571_v39 = vadd.f32 %v1051_v16, %v755_v35 }
 0x2d0   : > { %v1567_v37 = vadd.f32 %v1153_v36, %v1051_v16  ;;  %v758_v38 = vpop.f32.mrb[19].mxu0 }
 0x2d1   : > { %806 = vmax.xlane.f32.xlu0 %v1565_v34  ;;  %v1573_v40 = vadd.f32 %v1051_v16, %v758_v38 }
 0x2d2   : > { %808 = vmax.xlane.f32.xlu1 %v1567_v37 }
 0x2d5   : > { %v1156_v41 = vpop.f32.mrb[20].mxu0  ;;  %802 = vmax.xlane.f32.xlu0 %v1571_v39 }
 0x2d6   : > { %v771_v42 = vpop.f32.mrb[21].mxu0  ;;  %804 = vmax.xlane.f32.xlu1 %v1573_v40  ;;  %v1582_v47 = vadd.f32 %v1156_v41, %v1051_v16 }
 0x2d7   : > { %v1577_v43 = vadd.f32 %v1051_v16, %v771_v42  ;;  %v1157_v44 = vpop.f32.mrb[22].mxu0 }
 0x2d8   : > { %v774_v45 = vpop.f32.mrb[23].mxu0  ;;  %v1585_v48 = vadd.f32 %v1157_v44, %v1051_v16 }
 0x2d9   : > { %v1579_v46 = vadd.f32 %v1051_v16, %v774_v45  ;;  %810 = vmax.xlane.f32.xlu0 %v1577_v43 }
 0x2db   : > { %812 = vmax.xlane.f32.xlu1 %v1579_v46 }
 0x2dd   : > { %814 = vmax.xlane.f32.xlu0 %v1582_v47 }
 0x2df   : > { %816 = vmax.xlane.f32.xlu1 %v1585_v48 }
 0x34d   : > { %v791_v49 = vpop.xlane.xlu1 %790 }
 0x34e   : > { %v820_v50 = vsub.f32 %v732_v18, %v791_v49  ;;  %v787_v51 = vpop.xlane.xlu0 %786 }
 0x34f   : > { %v818_v52 = vsub.f32 %v724_v20, %v787_v51 }
 0x350   : > { %v838_v53 = vmul.f32 1.442695, %v820_v50 }
 0x351   : > { %v834_v54 = vmul.f32 1.442695, %v818_v52  ;;  %v793_v55 = vpop.xlane.xlu1 %792 }
 0x352   : > { %1273 = vpow2.f32 %v838_v53  ;;  %v821_v56 = vsub.f32 %v735_v23, %v793_v55  ;;  %v789_v57 = vpop.xlane.xlu0 %788 }
 0x353   : > { %v819_v58 = vsub.f32 %v727_v24, %v789_v57  ;;  %1275 = vpow2.f32 %v834_v54 }
 0x354   : > { %v840_v59 = vmul.f32 1.442695, %v821_v56 }
 0x355   : > { %v836_v60 = vmul.f32 1.442695, %v819_v58 }
 0x356   : > { %1277 = vpow2.f32 %v840_v59  ;;  %v799_v61 = vpop.xlane.xlu0 %798 }
 0x357   : > { %v824_v62 = vsub.f32 %v748_v26, %v799_v61  ;;  %v801_v63 = vpop.xlane.xlu1 %800  ;;  %1279 = vpow2.f32 %v836_v60 }
 0x358   : > { %v825_v0 = vsub.f32 %v751_v29, %v801_v63 }
 0x359   : > { %v846_v1 = vmul.f32 1.442695, %v824_v62 }
 0x35a   : > { %v848_v2 = vmul.f32 1.442695, %v825_v0  ;;  %v795_v3 = vpop.xlane.xlu0 %794 }
 0x35b   : > { %1281 = vpow2.f32 %v846_v1  ;;  %v822_v4 = vsub.f32 %v740_v31, %v795_v3  ;;  %v797_v5 = vpop.xlane.xlu1 %796 }
 0x35c   : > { %v1589_v6 = vpop.eup %1273  ;;  %v823_v7 = vsub.f32 %v743_v32, %v797_v5  ;;  %1283 = vpow2.f32 %v848_v2 }
 0x35d   : > { %v842_v8 = vmul.f32 1.442695, %v822_v4  ;;  %870 = vadd.xlane.f32.xlu0 %v1589_v6  ;;  %v1592_v11 = vpop.eup %1275 }
 0x35e   : > { %v844_v9 = vmul.f32 1.442695, %v823_v7  ;;  %v807_v10 = vpop.xlane.xlu0 %806 }
 0x35f   : > { %1285 = vpow2.f32 %v842_v8  ;;  %v828_v12 = vsub.f32 %v1565_v34, %v807_v10  ;;  %v809_v13 = vpop.xlane.xlu1 %808 }
 0x360   : > { %v1595_v14 = vpop.eup %1277  ;;  %v829_v15 = vsub.f32 %v1567_v37, %v809_v13  ;;  %1287 = vpow2.f32 %v844_v9 }
 0x361   : > { %v854_v16 = vmul.f32 1.442695, %v828_v12  ;;  %872 = vadd.xlane.f32.xlu1 %v1595_v14  ;;  %866 = vadd.xlane.f32.xlu0 %v1592_v11  ;;  %v1601_v21 = vpop.eup %1279 }
 0x362   : > { %v856_v17 = vmul.f32 1.442695, %v829_v15  ;;  %v803_v18 = vpop.xlane.xlu0 %802 }
 0x363   : > { %1289 = vpow2.f32 %v854_v16  ;;  %v826_v19 = vsub.f32 %v1571_v39, %v803_v18  ;;  %v805_v20 = vpop.xlane.xlu1 %804 }
 0x364   : > { %v827_v22 = vsub.f32 %v1573_v40, %v805_v20  ;;  %1291 = vpow2.f32 %v856_v17 }
 0x365   : > { %v1604_v23 = vpop.eup %1281  ;;  %v850_v24 = vmul.f32 1.442695, %v826_v19  ;;  %868 = vadd.xlane.f32.xlu1 %v1601_v21 }
 0x366   : > { %v852_v25 = vmul.f32 1.442695, %v827_v22  ;;  %878 = vadd.xlane.f32.xlu0 %v1604_v23  ;;  %v811_v26 = vpop.xlane.xlu0 %810  ;;  %v1609_v28 = vpop.eup %1283 }
 0x367   : > { %1293 = vpow2.f32 %v850_v24  ;;  %v830_v27 = vsub.f32 %v1577_v43, %v811_v26 }
 0x368   : > { %v813_v29 = vpop.xlane.xlu1 %812  ;;  %1295 = vpow2.f32 %v852_v25 }
 0x369   : > { %v1611_v30 = vpop.eup %1285  ;;  %v858_v31 = vmul.f32 1.442695, %v830_v27  ;;  %v831_v32 = vsub.f32 %v1579_v46, %v813_v29  ;;  %880 = vadd.xlane.f32.xlu1 %v1609_v28 }
 0x36a   : > { %874 = vadd.xlane.f32.xlu0 %v1611_v30  ;;  %v815_v33 = vpop.xlane.xlu0 %814  ;;  %v1617_v36 = vpop.eup %1287 }
 0x36b   : > { %1297 = vpow2.f32 %v858_v31  ;;  %v860_v34 = vmul.f32 1.442695, %v831_v32  ;;  %v832_v35 = vsub.f32 %v1582_v47, %v815_v33 }
 0x36c   : > { %v817_v37 = vpop.xlane.xlu1 %816 }
 0x36d   : > { %v1619_v38 = vpop.eup %1289  ;;  %1299 = vpow2.f32 %v860_v34  ;;  %v862_v39 = vmul.f32 1.442695, %v832_v35  ;;  %v833_v40 = vsub.f32 %v1585_v48, %v817_v37  ;;  %876 = vadd.xlane.f32.xlu1 %v1617_v36 }
 0x36e   : > { %886 = vadd.xlane.f32.xlu0 %v1619_v38  ;;  %v1624_v42 = vpop.eup %1291 }
 0x36f   : > { %1301 = vpow2.f32 %v862_v39  ;;  %v864_v41 = vmul.f32 1.442695, %v833_v40 }
 0x371   : > { %v1626_v43 = vpop.eup %1293  ;;  %1303 = vpow2.f32 %v864_v41  ;;  %888 = vadd.xlane.f32.xlu1 %v1624_v42 }
 0x372   : > { %882 = vadd.xlane.f32.xlu0 %v1626_v43  ;;  %v1630_v44 = vpop.eup %1295 }
 0x375   : > { %v1632_v45 = vpop.eup %1297  ;;  %884 = vadd.xlane.f32.xlu1 %v1630_v44 }
 0x376   : > { %890 = vadd.xlane.f32.xlu0 %v1632_v45 }
 0x377   : > { %v1636_v46 = vpop.eup %1299 }
 0x379   : > { %v1638_v47 = vpop.eup %1301  ;;  %892 = vadd.xlane.f32.xlu1 %v1636_v46 }
 0x37a   : > { %894 = vadd.xlane.f32.xlu0 %v1638_v47 }
 0x37b   : > { %v1642_v48 = vpop.eup %1303 }
 0x37d   : > { %896 = vadd.xlane.f32.xlu1 %v1642_v48 }
 0x3ea   : > { %v871_v49 = vpop.xlane.xlu0 %870 }
 0x3eb   : > { %1305 = vrcp.f32 %v871_v49 }
 0x3ee   : > { %v873_v50 = vpop.xlane.xlu1 %872  ;;  %v867_v51 = vpop.xlane.xlu0 %866 }
 0x3ef   : > { %1307 = vrcp.f32 %v873_v50 }
 0x3f0   : > { %1309 = vrcp.f32 %v867_v51 }
 0x3f2   : > { %v869_v52 = vpop.xlane.xlu1 %868 }
 0x3f3   : > { %1311 = vrcp.f32 %v869_v52  ;;  %v879_v53 = vpop.xlane.xlu0 %878 }
 0x3f4   : > { %1313 = vrcp.f32 %v879_v53 }
 0x3f5   : > { %v1306_v54 = vpop.eup %1305 }
 0x3f6   : > { %v903_v55 = vmul.f32 %v1306_v54, %v1589_v6  ;;  %v881_v56 = vpop.xlane.xlu1 %880 }
 0x3f7   : > { %1315 = vrcp.f32 %v881_v56  ;;  %v875_v57 = vpop.xlane.xlu0 %874 }
 0x3f8   : > { %932 = vst [vmem:[%s1649_s29 + $0x10] sm:$0xff] %v903_v55  ;;  %1317 = vrcp.f32 %v875_v57 }
 0x3f9   : > { %v1308_v58 = vpop.eup %1307 }
 0x3fa   : > { %v1310_v59 = vpop.eup %1309  ;;  %v905_v60 = vmul.f32 %v1308_v58, %v1595_v14  ;;  %v877_v61 = vpop.xlane.xlu1 %876 }
 0x3fb   : > { %v899_v62 = vmul.f32 %v1310_v59, %v1592_v11  ;;  %1319 = vrcp.f32 %v877_v61  ;;  %v887_v63 = vpop.xlane.xlu0 %886 }
 0x3fc   : > { %933 = vst [vmem:[%s1649_s29 + $0x18] sm:$0xff] %v905_v60  ;;  %1321 = vrcp.f32 %v887_v63 }
 0x3fd   : > { %v1312_v0 = vpop.eup %1311  ;;  %930 = vst [vmem:[%s1649_s29] sm:$0xff] %v899_v62 }
 0x3fe   : > { %v1314_v1 = vpop.eup %1313  ;;  %v901_v2 = vmul.f32 %v1312_v0, %v1601_v21  ;;  %v889_v3 = vpop.xlane.xlu1 %888 }
 0x3ff   : > { %v911_v4 = vmul.f32 %v1314_v1, %v1604_v23  ;;  %1323 = vrcp.f32 %v889_v3  ;;  %v883_v5 = vpop.xlane.xlu0 %882 }
 0x400   : > { %931 = vst [vmem:[%s1649_s29 + $0x8] sm:$0xff] %v901_v2  ;;  %1325 = vrcp.f32 %v883_v5 }
 0x401   : > { %v1316_v6 = vpop.eup %1315  ;;  %936 = vst [vmem:[%s1649_s29 + $0x30] sm:$0xff] %v911_v4 }
 0x402   : > { %v1318_v7 = vpop.eup %1317  ;;  %v913_v8 = vmul.f32 %v1316_v6, %v1609_v28  ;;  %v885_v9 = vpop.xlane.xlu1 %884 }
 0x403   : > { %v907_v10 = vmul.f32 %v1318_v7, %v1611_v30  ;;  %1327 = vrcp.f32 %v885_v9  ;;  %v891_v11 = vpop.xlane.xlu0 %890 }
 0x404   : > { %937 = vst [vmem:[%s1649_s29 + $0x38] sm:$0xff] %v913_v8  ;;  %1329 = vrcp.f32 %v891_v11 }
 0x405   : > { %v1320_v12 = vpop.eup %1319  ;;  %934 = vst [vmem:[%s1649_s29 + $0x20] sm:$0xff] %v907_v10 }
 0x406   : > { %v1322_v13 = vpop.eup %1321  ;;  %v909_v14 = vmul.f32 %v1320_v12, %v1617_v36  ;;  %v893_v15 = vpop.xlane.xlu1 %892 }
 0x407   : > { %v919_v16 = vmul.f32 %v1322_v13, %v1619_v38  ;;  %1331 = vrcp.f32 %v893_v15  ;;  %v895_v17 = vpop.xlane.xlu0 %894 }
 0x408   : > { %935 = vst [vmem:[%s1649_s29 + $0x28] sm:$0xff] %v909_v14  ;;  %1333 = vrcp.f32 %v895_v17 }
 0x409   : > { %v1324_v18 = vpop.eup %1323  ;;  %940 = vst [vmem:[%s1649_s29 + $0x50] sm:$0xff] %v919_v16 }
 0x40a   : > { %v1326_v19 = vpop.eup %1325  ;;  %v921_v20 = vmul.f32 %v1324_v18, %v1624_v42  ;;  %v897_v21 = vpop.xlane.xlu1 %896 }
 0x40b   : > { %v915_v22 = vmul.f32 %v1326_v19, %v1626_v43  ;;  %1335 = vrcp.f32 %v897_v21 }
 0x40c   : > { %941 = vst [vmem:[%s1649_s29 + $0x58] sm:$0xff] %v921_v20 }
 0x40d   : > { %v1328_v23 = vpop.eup %1327  ;;  %938 = vst [vmem:[%s1649_s29 + $0x40] sm:$0xff] %v915_v22 }
 0x40e   : > { %v1330_v24 = vpop.eup %1329  ;;  %v917_v25 = vmul.f32 %v1328_v23, %v1630_v44 }
 0x40f   : > { %v923_v26 = vmul.f32 %v1330_v24, %v1632_v45 }
 0x410   : > { %939 = vst [vmem:[%s1649_s29 + $0x48] sm:$0xff] %v917_v25 }
 0x411   : > { %v1332_v27 = vpop.eup %1331  ;;  %942 = vst [vmem:[%s1649_s29 + $0x60] sm:$0xff] %v923_v26 }
 0x412   : > { %v1334_v28 = vpop.eup %1333  ;;  %v925_v29 = vmul.f32 %v1332_v27, %v1636_v46 }
 0x413   : > { %v927_v30 = vmul.f32 %v1334_v28, %v1638_v47 }
 0x414   : > { %943 = vst [vmem:[%s1649_s29 + $0x68] sm:$0xff] %v925_v29 }
 0x415   : > { %v1336_v31 = vpop.eup %1335  ;;  %944 = vst [vmem:[%s1649_s29 + $0x70] sm:$0xff] %v927_v30 }
 0x416   : > { %v929_v32 = vmul.f32 %v1336_v31, %v1642_v48 }
 0x418   : > { %945 = vst [vmem:[%s1649_s29 + $0x78] sm:$0xff] %v929_v32 }
 0x419   : > { %1350 = shalt.err (!%p1347_p3)
}
 0x41a   : > { %s1351_s20 = scalar_lea.hbm %s1685_s15, 2048  ;;  %s1355_s23 = scalar_lea.hbm %s1741_s7, 4096 }
 0x41b   : > { %p1352_p4 = scmp.ne.s32.totalorder %s1685_s15, %s1351_s20  ;;  %p1356_p9 = scmp.lt.u32.totalorder %s1685_s15, %s1741_s7 }
 0x41c   : > { %p1357_p10 = scmp.lt.u32.totalorder %s1355_s23, %s1351_s20  ;;  %p1359_p12 = scmp.lt.u32.totalorder %s1351_s20, %s1685_s15 }
 0x41d   : > { %p1353_p7 = pnand %p1352_p4, %p1482_p5 }
 0x41e   : > { %p1358_p11 = por %p1357_p10, %p1356_p9 }
 0x41f   : > { %p1354_p8 = pneg %p1353_p7 }
 0x420   : > { %p1360_p13 = por %p1359_p12, %p1358_p11 }
 0x422   : > { %p1361_p0 = pnand %p1360_p13, %p1354_p8 }
 0x424   : > { %1364 = shalt.err (!%p1361_p0)
}
 0x425   : > { %s1402_s13 = smov 128   ;;  %s1403_s14 = smov 8  }
 0x426   : > { %1162 = dma.vmem_to_hbm [thread:$0]  (%p1482_p5), %s1687_s9, 2048, %s1685_s15, %s1693_s28, %s1402_s13, %s1402_s13, %s1403_s14  }
 0x427 PF: > { %p1168_p1 = scmp.ge.s32.totalorder %s1399_s27, 2  ;;  %s975_s16 = sand.u32 1, %s1387_s24  }
 0x428   : > { %s976_s17 = scalar_lea.sflag [#allocation3], %s975_s16 }
 0x429   : > { %p1165_p2 = pnand %p1168_p1, %p1486_p6 }
 0x42b   : > { %1382 = dma.done.wait (!%p1165_p2), %s976_s17, 2048  }
 0x42c   : > { %1384 = vsyncadd (!%p1165_p2), %s976_s17, 4294965248  ;;  %p17_p3 = scmp.ge.s32.totalorder %s1469_s30, 4   ;;  %s1744_s24 = smov %s1391_s25 }
 0x42d   : > { %s1745_s25 = smov %s1395_s26  ;;  %s1746_s26 = smov %s1480_s10 }
 0x42e   : > { %s1747_s27 = smov %s1469_s30  ;;  %19 = sbr.rel (!%p17_p3) target bundleno = 3 (0x3), region = 83 }
 0x435   :  { %981 = vsyncpa [#allocation3], 1 }
 0x436   :  { %983 = vsyncpa [#allocation3 + $0x1], 1 }

</bundles_post_ra>
